<compile_context>
chip_gen: v6e
topology: v6e:2x2x1
jax: 0.10.0
libtpu: 0.0.40
codegen_flags: <defaults>
</compile_context>

<pallas_src>
import jax
import jax.numpy as jnp
from jax.experimental import pallas as pl
from jax.experimental.pallas import tpu as pltpu


_LANES = 128
_TILE_BYTES = 2 << 20     # per-stream tile budget (~2 MiB); keeps the 3-stream
                          # double-buffered pipeline under every generation's
                          # default scoped-VMEM limit while amortizing the
                          # ~0.35 us/grid-step overhead to a few percent.
_SPLIT_BYTES = 1 << 20    # slabs bigger than this always get >= 2 grid steps
                          # so both v7x TensorCores stream HBM.
_ROW_ALIGN = 32           # lcm of sublane packs (f32:8, bf16:16, int8:32) so
                          # one tile shape is legal for x/y/g and the int8 mask.


# ---------------------------------------------------------------------------
# Pallas kernels (elementwise; VPU has huge slack, keep them simple)
# ---------------------------------------------------------------------------
def _fwd_kernel(bound_ref, x_ref, y_ref):
    b = bound_ref[0].astype(x_ref.dtype)
    y_ref[...] = jnp.maximum(x_ref[...], b)


def _fwd_mask_kernel(bound_ref, x_ref, y_ref, mask_ref):
    b = bound_ref[0].astype(x_ref.dtype)
    x = x_ref[...]
    y_ref[...] = jnp.maximum(x, b)
    # int8 residual mask: the extra compare + cast is free VPU slack.
    mask_ref[...] = (x >= b).astype(jnp.int8)


def _bwd_kernel(mask_ref, g_ref, gx_ref):
    g = g_ref[...]
    keep = (mask_ref[...] != 0) | (g < 0)
    gx_ref[...] = jnp.where(keep, g, jnp.zeros_like(g))


# ---------------------------------------------------------------------------
# Tiling helper: byte-budget rows, rounded so every stream's block is legal.
# ---------------------------------------------------------------------------
def _tile_rows(rows, itemsize):
    budget = (_TILE_BYTES // (_LANES * itemsize)) // _ROW_ALIGN * _ROW_ALIGN
    budget = max(budget, _ROW_ALIGN)
    if rows > budget:
        return budget
    # Whole slab fits in one tile.  If it is non-trivial, still split it in two
    # so the "parallel" grid axis can be sharded across v7x's 2 TensorCores.
    if rows * _LANES * itemsize > _SPLIT_BYTES:
        half = -(-rows // 2)
        return -(-half // _ROW_ALIGN) * _ROW_ALIGN
    return rows               # block == full dim: always a legal block shape


# ---------------------------------------------------------------------------
# pallas_call wrappers: 1-D row grid, double-buffered, megacore-parallel
# ---------------------------------------------------------------------------
def _call_fwd(x2d, bound1, with_mask):
    rows, lanes = x2d.shape
    itemsize = jnp.dtype(x2d.dtype).itemsize
    tr = _tile_rows(rows, itemsize)
    spec = pl.BlockSpec((tr, lanes), lambda i: (i, 0))
    nbytes = rows * lanes * itemsize

    if with_mask:
        kernel = _fwd_mask_kernel
        out_shape = (jax.ShapeDtypeStruct(x2d.shape, x2d.dtype),
                     jax.ShapeDtypeStruct(x2d.shape, jnp.int8))
        out_specs = (spec, spec)
        bytes_accessed = 2 * nbytes + rows * lanes        # x + y + int8 mask
    else:
        kernel = _fwd_kernel
        out_shape = jax.ShapeDtypeStruct(x2d.shape, x2d.dtype)
        out_specs = spec
        bytes_accessed = 2 * nbytes                        # x + y

    return pl.pallas_call(
        kernel,
        out_shape=out_shape,
        grid=(pl.cdiv(rows, tr),),
        in_specs=[
            pl.BlockSpec(memory_space=pltpu.MemorySpace.SMEM),   # bound scalar
            spec,                                                # x tile
        ],
        out_specs=out_specs,
        compiler_params=pltpu.CompilerParams(
            dimension_semantics=("parallel",)),
        cost_estimate=pl.CostEstimate(
            flops=rows * lanes, transcendentals=0,
            bytes_accessed=bytes_accessed),
    )(bound1, x2d)


def _call_bwd(mask2d, g2d):
    rows, lanes = g2d.shape
    itemsize = jnp.dtype(g2d.dtype).itemsize
    tr = _tile_rows(rows, itemsize)
    spec = pl.BlockSpec((tr, lanes), lambda i: (i, 0))
    nbytes = rows * lanes * itemsize

    return pl.pallas_call(
        _bwd_kernel,
        out_shape=jax.ShapeDtypeStruct(g2d.shape, g2d.dtype),
        grid=(pl.cdiv(rows, tr),),
        in_specs=[spec, spec],                 # int8 mask tile, g tile
        out_specs=spec,
        # grad_x is written in place over the (dead) cotangent slab.
        input_output_aliases={1: 0},
        compiler_params=pltpu.CompilerParams(
            dimension_semantics=("parallel",)),
        cost_estimate=pl.CostEstimate(
            flops=rows * lanes, transcendentals=0,
            bytes_accessed=2 * nbytes + rows * lanes),     # g + gx + int8 mask
    )(mask2d, g2d)


# ---------------------------------------------------------------------------
# Flatten helpers (glue) — no full-array pad/slice passes on ragged shapes.
# ---------------------------------------------------------------------------
def _split_flat(x):
    """Flatten x; return a lane-aligned (rows, 128) bulk slab plus a <128-elem
    tail (None when empty).  No zero-padding of the whole array."""
    flat = x.reshape(-1)
    n = flat.shape[0]
    n_bulk = (n // _LANES) * _LANES
    bulk = flat[:n_bulk].reshape(n_bulk // _LANES, _LANES) if n_bulk > 0 else None
    tail = flat[n_bulk:] if (n - n_bulk) > 0 else None
    return bulk, tail


def _merge_flat(bulk, tail, shape):
    parts = []
    if bulk is not None:
        parts.append(bulk.reshape(-1))
    if tail is not None:
        parts.append(tail)
    flat = parts[0] if len(parts) == 1 else jnp.concatenate(parts)
    return flat.reshape(shape)


def _bound_scalar(bound):
    return jnp.asarray(bound, jnp.float32).reshape(1)


# ---------------------------------------------------------------------------
# LowerBound op with custom gradient (mirrors LowerBoundFunction)
# ---------------------------------------------------------------------------
def _forward_impl(x, bound, with_mask):
    bulk, tail = _split_flat(x)
    b1 = _bound_scalar(bound)
    bulk_y, bulk_mask, tail_y = None, None, None
    if bulk is not None:
        if with_mask:
            bulk_y, bulk_mask = _call_fwd(bulk, b1, True)
        else:
            bulk_y = _call_fwd(bulk, b1, False)
    if tail is not None:
        tail_y = jnp.maximum(tail, b1[0].astype(tail.dtype))
    return _merge_flat(bulk_y, tail_y, x.shape), bulk_mask, tail


@jax.custom_vjp
def lower_bound(x, bound):
    y, _, _ = _forward_impl(x, bound, with_mask=False)
    return y


def _lb_fwd(x, bound):
    y, bulk_mask, tail_x = _forward_impl(x, bound, with_mask=True)
    # Residuals: int8 mask for the bulk (4x smaller than saving x), the tiny
    # raw tail, and bound (only for the tail compare / zeros_like below).
    return y, (bulk_mask, tail_x, bound)


def _lb_bwd(res, g):
    bulk_mask, tail_x, bound = res
    g_bulk, g_tail = _split_flat(g)
    gx_bulk, gx_tail = None, None
    if g_bulk is not None:
        gx_bulk = _call_bwd(bulk_mask, g_bulk)
    if g_tail is not None:
        b = _bound_scalar(bound)[0].astype(tail_x.dtype)
        keep = (tail_x >= b) | (g_tail < 0)
        gx_tail = jnp.where(keep, g_tail, jnp.zeros_like(g_tail))
    gx = _merge_flat(gx_bulk, gx_tail, g.shape)
    # PyTorch returns None for the bound gradient (non-trainable buffer);
    # zeros mirror that here.
    # TODO(synk): if `bound` is ever made trainable, its gradient is
    # sum(g * ((x < bound) & (g >= 0))).
    return gx, jnp.zeros_like(bound)


lower_bound.defvjp(_lb_fwd, _lb_bwd)


class LowerBound:
    """JAX/Pallas equivalent of compressai's LowerBound module."""

    def __init__(self, bound: float):
        # register_buffer('bound', torch.Tensor([float(bound)])) -> shape (1,)
        self.bound = jnp.array([float(bound)], dtype=jnp.float32)

    def __call__(self, x):
        return lower_bound(x, self.bound)


# ---------------------------------------------------------------------------
if __name__ == "__main__":
    key = jax.random.PRNGKey(0)
    kx, kg, kr, kl = jax.random.split(key, 4)

    mod = LowerBound(0.1)
    b = mod.bound[0]

    # NCHW input, same convention as the PyTorch module.
    x = jax.random.normal(kx, (2, 4, 16, 16), dtype=jnp.float32)

    # ---- forward through the Pallas kernel ----
    y = jax.block_until_ready(mod(x))
    assert jnp.allclose(y, jnp.maximum(x, b)), "forward mismatch"

    # ---- backward: custom VJP with an explicit cotangent ----
    g = jax.random.normal(kg, x.shape, dtype=jnp.float32)
    _, vjp_fn = jax.vjp(mod, x)
    (gx,) = vjp_fn(g)
    gx = jax.block_until_ready(gx)
    gx_ref = jnp.where((x >= b) | (g < 0), g, 0.0)
    assert jnp.allclose(gx, gx_ref, atol=1e-6), "backward (vjp) mismatch"

    # ---- backward through a composed loss (full product-rule reference) ----
    gfull = jax.grad(lambda a: jnp.sum(mod(a) * jnp.cos(a)))(x)
    gfull = jax.block_until_ready(gfull)
    g_up = jnp.cos(x)  # upstream grad w.r.t. max(x, bound)
    gfull_ref = (jnp.where((x >= b) | (g_up < 0), g_up, 0.0)
                 - jnp.maximum(x, b) * jnp.sin(x))
    assert jnp.allclose(gfull, gfull_ref, atol=1e-5), "composed grad mismatch"

    # ---- ragged shape (numel % 128 != 0): bulk-through-kernel + jnp tail ----
    xr = jax.random.normal(kr, (2, 3, 5, 7), dtype=jnp.float32)
    yr = jax.block_until_ready(mod(xr))
    assert jnp.allclose(yr, jnp.maximum(xr, b)), "ragged forward mismatch"
    gr = jax.block_until_ready(jax.grad(lambda a: jnp.sum(mod(a)))(xr))
    assert jnp.allclose(gr, (xr >= b).astype(jnp.float32)), "ragged grad mismatch"

    # ---- 2 MiB activation exercises the multi-tile / megacore-split grid ----
    xl = jax.random.normal(kl, (4, 32, 64, 64), dtype=jnp.float32)
    yl = jax.block_until_ready(mod(xl))
    assert jnp.allclose(yl, jnp.maximum(xl, b)), "large forward mismatch"
    gl = jax.block_until_ready(jax.grad(lambda a: jnp.sum(mod(a)))(xl))
    assert jnp.allclose(gl, (xl >= b).astype(jnp.float32)), "large grad mismatch"

    # ---- bf16 path (different sublane pack, same tiles) ----
    xb = x.astype(jnp.bfloat16)
    yb = jax.block_until_ready(mod(xb))
    assert jnp.allclose(yb, jnp.maximum(xb, b.astype(jnp.bfloat16))), "bf16 mismatch"

    print("KERNEL_OK")
</pallas_src>

<mosaic_0001>
module attributes {stable_mosaic.version = 11 : i64} {
  func.func @_fwd_kernel(%arg0: i32, %arg1: memref<1xf32, #tpu.memory_space<smem>>, %arg2: memref<16x128xf32, #tpu.memory_space<vmem>>, %arg3: memref<16x128xf32, #tpu.memory_space<vmem>>) attributes {dimension_semantics = [#tpu.dimension_semantics<parallel>], iteration_bounds = array<i64: 1>, scalar_prefetch = 0 : i64, scratch_operands = 0 : i64, tpu.core_type = #tpu.core_type<tc>, window_params = [{transform_indices = @transform_0, window_bounds = array<i64: 1>}, {transform_indices = @transform_1, window_bounds = array<i64: 16, 128>}, {transform_indices = @transform_2, window_bounds = array<i64: 16, 128>}]} {
    %c0 = arith.constant 0 : index
    %0 = memref.load %arg1[%c0] : memref<1xf32, #tpu.memory_space<smem>>
    %c0_0 = arith.constant 0 : index
    %c0_1 = arith.constant 0 : index
    %1 = vector.load %arg2[%c0_0, %c0_1] : memref<16x128xf32, #tpu.memory_space<vmem>>, vector<16x128xf32>
    %2 = vector.broadcast %0 : f32 to vector<16x128xf32>
    %3 = arith.maximumf %1, %2 : vector<16x128xf32>
    %c0_2 = arith.constant 0 : index
    %c0_3 = arith.constant 0 : index
    %4 = vector.load %arg3[%c0_2, %c0_3] : memref<16x128xf32, #tpu.memory_space<vmem>>, vector<16x128xf32>
    tpu.vector_store %arg3[%c0_2, %c0_3], %3 {strides = array<i32>} : memref<16x128xf32, #tpu.memory_space<vmem>>, vector<16x128xf32>,
    return
  }
  func.func @transform_0(%arg0: i32) -> i32 {
    %c0_i32 = arith.constant 0 : i32
    %c0_i32_0 = arith.constant 0 : i32
    return %c0_i32 : i32
  }
  func.func @transform_1(%arg0: i32) -> (i32, i32) {
    %c0_i32 = arith.constant 0 : i32
    %c0_i32_0 = arith.constant 0 : i32
    return %arg0, %c0_i32 : i32, i32
  }
  func.func @transform_2(%arg0: i32) -> (i32, i32) {
    %c0_i32 = arith.constant 0 : i32
    %c0_i32_0 = arith.constant 0 : i32
    return %arg0, %c0_i32 : i32, i32
  }
}

</mosaic_0001>

<bundles_post_ra>
// kernel: tpu_custom_call.1
= control target key start
LH: loop header
LB: loop body
LE: loop exit
PB: predicated region body
PF: predicated region fallthrough
CT: control target
= control target key end

     0   :  { %8 = vsyncpa [#allocation4], 0  ;;  %s128_s0 = inlined_call_operand.<no memory space> [shape: f32[1], index: 0, kind: input, shape index: {}]   ;;  %s129_s1 = inlined_call_operand.hbm [shape: f32[16,128], index: 1, kind: input, shape index: {}]   ;;  %s130_s2 = inlined_call_operand.hbm [shape: f32[16,128], index: 2, kind: output, shape index: {}]  }
   0x1   :  { %9 = vsyncpa [#allocation5], 0  ;;  %s100_s9 = smov [#allocation3]  }
   0x2   :  { %s17_s10 = sshll.u32 %s100_s9, 4  ;;  %s18_s10 = int_to_ptr.vmem [resolvable:$true] %s17_s10 }
   0x3   :  { %s64_s11 = scalar_lea.vmem %s18_s10, 256  ;;  %p69_p1 = scmp.lt.s32.totalorder %s18_s10, %s18_s10 }
   0x4   :  { %p65_p0 = scmp.ne.s32.totalorder %s18_s10, %s64_s11  ;;  %p70_p2 = scmp.lt.s32.totalorder %s64_s11, %s64_s11 }
   0x6   :  { %p71_p3 = por %p70_p2, %p69_p1 }
   0x8   :  { %p72_p4 = pnand %p71_p3, %p65_p0 }
   0xa   :  { %75 = shalt.err (!%p72_p4)
}
   0xb   :  { %s101_s12 = smov 128   ;;  %s102_s13 = smov 8  }
   0xc   :  { %23 = dma.hbm_to_vmem [thread:$0]  %s129_s1, 256, %s18_s10, [#allocation4], %s101_s12, %s101_s12, %s102_s13  }
   0xd   :  { %96 = dma.done.wait [#allocation4], 256  }
   0xe   :  { %97 = vsyncadd [#allocation4], 4294967040  ;;  %v30_v0 = vstv %s128_s0  ;;  %s103_s18 = smov [#allocation6]   ;;  %v28_v1 = vld [vmem:[#allocation3] sm:$0xff]  ;;  %v29_v2 = vld [vmem:[#allocation3 + $0x8] sm:$0xff] }
   0xf   :  { %s40_s19 = sshll.u32 %s103_s18, 4  ;;  %v31_v3 = vmax.f32 %v28_v1, %v30_v0  ;;  %v32_v4 = vmax.f32 %v29_v2, %v30_v0  ;;  %s41_s19 = int_to_ptr.vmem [resolvable:$true] %s40_s19 }
  0x10   :  { %s76_s20 = scalar_lea.vmem %s41_s19, 256  ;;  %p81_p6 = scmp.lt.s32.totalorder %s41_s19, %s41_s19 }
  0x11   :  { %33 = vst [vmem:[#allocation6] sm:$0xff] %v31_v3  ;;  %34 = vst [vmem:[#allocation6 + $0x8] sm:$0xff] %v32_v4  ;;  %p77_p5 = scmp.ne.s32.totalorder %s41_s19, %s76_s20  ;;  %p82_p7 = scmp.lt.s32.totalorder %s76_s20, %s76_s20 }
  0x13   :  { %p83_p8 = por %p82_p7, %p81_p6 }
  0x15   :  { %p84_p9 = pnand %p83_p8, %p77_p5 }
  0x17   :  { %87 = shalt.err (!%p84_p9)
}
  0x18   :  { %46 = dma.vmem_to_hbm [thread:$0]  %s41_s19, 256, %s130_s2, [#allocation5], %s101_s12, %s101_s12, %s102_s13  }
  0x19   :  { %98 = dma.done.wait [#allocation5], 256  }
  0x1a   :  { %99 = vsyncadd [#allocation5], 4294967040 }
  0x1b   :  { %50 = vsyncpa [#allocation4], 1 }
  0x1c   :  { %51 = vsyncpa [#allocation5], 1 }

</bundles_post_ra>
